<compile_context>
chip_gen: v6e
topology: v6e:2x2x1
jax: 0.10.0
libtpu: 0.0.40
codegen_flags: <defaults>
</compile_context>

<pallas_src>
import functools
import math

import jax
import jax.numpy as jnp
from jax import lax
from jax.experimental import pallas as pl
from jax.experimental.pallas import tpu as pltpu

NUM_CLASSES = 4
INITIAL_TEMP = 1.5
MIN_TEMP = 0.1
MAX_TEMP = 5.0


def _vmem_capacity_bytes():
    try:
        return int(pltpu.get_tpu_info().vmem_capacity_bytes)
    except Exception:
        return 128 * 1024 * 1024


def _adaptive_temp_kernel(x_ref, pr_ref, pg_ref, o_ref, *,
                          base, g_sub, gc2, num_c, bb, inv_log_c, inv_hw):
    pr = pr_ref[...]                      # (base, (C+1)*base + g_sub + gc2 + 5)
    pg = pg_ref[...]                      # (gc2 + g_sub, base)

    # Static unpack (done once, hoisted out of the sub-block loop).
    tp1 = pr[:, 0:base]                                   # temp-pred conv1 (+BN folded)
    tp2 = pr[:, base:2 * base]                            # temp-pred conv2
    perms = [pr[:, (1 + c) * base:(2 + c) * base]         # group-cyclic channel perms
             for c in range(1, num_c)]
    off = (num_c + 1) * base
    expand = pr[:, off:off + g_sub]                        # (base, g_sub) 0/1 broadcast
    ca2 = pr[:, off + g_sub:off + g_sub + gc2]             # channel-attn conv2
    c0 = off + g_sub + gc2
    bt_col = pr[:, c0 + 0:c0 + 1]                          # base temperature per row
    tpb1_col = pr[:, c0 + 1:c0 + 2]
    tpb2_col = pr[:, c0 + 2:c0 + 3]
    cab2_col = pr[:, c0 + 3:c0 + 4]
    cab1_col = pr[0:gc2, c0 + 4:c0 + 5]
    ca1 = pg[0:gc2, :]                                     # channel-attn conv1
    seg = pg[gc2:gc2 + g_sub, :]                           # (g_sub, base) 0/1 seg-sum

    def process(j):
        r0 = j * base
        if not isinstance(r0, int):
            r0 = pl.multiple_of(r0, base)
        xs = x_ref[pl.ds(r0, base), :]                     # (base, L) f32

        # ---- per-image, per-pixel max (robust softmax shift) ----
        m = xs
        for p in perms:
            m = jnp.maximum(m, jnp.dot(p, xs, preferred_element_type=jnp.float32))

        # ---- confidence = 1 - entropy(softmax over channels) / log(C) ----
        # entropy = log(S) - (sum_c e_c*(x_c - m)) / S,  e = exp(x - m)
        d = xs - m
        e = jnp.exp(d)
        s_g = jnp.dot(seg, e, preferred_element_type=jnp.float32)      # (g_sub, L)
        w_g = jnp.dot(seg, e * d, preferred_element_type=jnp.float32)  # (g_sub, L)
        s_g = jnp.maximum(s_g, 1e-30)
        r_s = pl.reciprocal(s_g, approx=True)
        r_s = r_s * (2.0 - s_g * r_s)                                  # Newton refine
        conf_g = 1.0 - (jnp.log(s_g) - w_g * r_s) * inv_log_c
        conf = jnp.dot(expand, conf_g, preferred_element_type=jnp.float32)

        # ---- channel attention: spatial mean -> conv -> relu -> conv -> sigmoid ----
        # Padded lanes are zero; divide by the true H*W so the mean is exact.
        pooled = jnp.sum(xs, axis=1, keepdims=True) * inv_hw           # (base, 1)
        h = jnp.maximum(
            jnp.dot(ca1, pooled, preferred_element_type=jnp.float32) + cab1_col, 0.0)
        cw = jax.nn.sigmoid(
            jnp.dot(ca2, h, preferred_element_type=jnp.float32) + cab2_col)
        bt_cw = bt_col * cw                                            # (base, 1)

        # ---- temp predictor: conv(+BN folded) -> relu -> conv, 0.5 + sigmoid ----
        h1 = jnp.maximum(
            jnp.dot(tp1, xs, preferred_element_type=jnp.float32) + tpb1_col, 0.0)
        z = jnp.dot(tp2, h1, preferred_element_type=jnp.float32) + tpb2_col
        tf = 1.0 + 0.5 * jnp.tanh(0.5 * z)        # == 0.5 + sigmoid(z), 1 EUP op

        # ---- effective temperature, clamp, scale ----
        eff = jnp.clip((bt_cw * tf) * conf, MIN_TEMP, MAX_TEMP)
        r_e = pl.reciprocal(eff, approx=True)
        r_e = r_e * (2.0 - eff * r_e)             # 1 NR step: ~1e-7 rel error
        o_ref[pl.ds(r0, base), :] = xs * r_e

    if bb <= 8:
        for j in range(bb):                       # short fixed trip-count: unroll fully
            process(j)
    else:
        def loop_body(j, carry):
            process(j)
            return carry
        lax.fori_loop(0, bb, loop_body, 0, unroll=4)


def adaptive_temperature_scaling(logits, params, *, target_block_bytes=None):
    """logits: (N, C, H, W) float32; params: dict of small per-channel arrays."""
    N, C, H, W = logits.shape
    HW = H * W
    C2 = max(C // 2, 1)
    f32 = jnp.float32

    base = 8 * C // math.gcd(8, C)       # rows per sub-block (lcm(8, C))
    g_sub = base // C                    # images per sub-block
    gc2 = g_sub * C2
    L = ((HW + 127) // 128) * 128        # lane-dense pixel extent
    R_total = N * C
    n_sub_total = -(-R_total // base)    # sub-blocks of real work

    # ---- tile sizing (generation-aware via VMEM capacity) ----
    vmem_cap = _vmem_capacity_bytes()
    if target_block_bytes is None:
        target_block_bytes = max(512 * 1024, min(8 * 1024 * 1024, vmem_cap // 16))
    sub_bytes = base * L * 4
    bb = max(1, min(n_sub_total, target_block_bytes // sub_bytes))
    if n_sub_total > 1:                  # keep >= 2 grid blocks for v7x megacore
        bb = min(bb, -(-n_sub_total // 2))
    n_blocks = -(-n_sub_total // bb)
    R = base * bb                        # rows per grid block
    R_pad = n_blocks * R
    tile_bytes = R * L * 4
    vmem_limit = int(min(vmem_cap * 3 // 4, max(64 * 1024 * 1024, 6 * tile_bytes)))

    # ---- pack (N, C, H, W) -> (R_pad, L); zero pad rows (whole images) and lanes ----
    x = logits.reshape(R_total, HW).astype(f32)
    if R_pad != R_total or L != HW:
        x = jnp.pad(x, ((0, R_pad - R_total), (0, L - HW)))

    # ---- per-sub-block shared parameter matrices (tiny, built once) ----
    rows = jnp.arange(base)
    grp = rows // C                      # image index of each row within a sub-block
    ch = rows % C                        # channel index of each row
    q = jnp.arange(gc2)
    qg = q // C2                         # image index of each hidden-unit row
    qj = q % C2                          # hidden-unit index

    same = grp[:, None] == grp[None, :]
    tp1_bd = jnp.where(same, params["tp_w1"][ch[:, None], ch[None, :]], 0.0)
    tp2_bd = jnp.where(same, params["tp_w2"][ch[:, None], ch[None, :]], 0.0)
    maxperms = []
    for c in range(1, C):                # P_c: row i <- row (same image, channel+ c mod C)
        tgt = grp * C + (ch + c) % C
        maxperms.append((jnp.arange(base)[None, :] == tgt[:, None]).astype(f32))
    ca1_bd = jnp.where(qg[:, None] == grp[None, :],
                       params["ca_w1"][qj[:, None], ch[None, :]], 0.0)
    ca2_bd = jnp.where(grp[:, None] == qg[None, :],
                       params["ca_w2"][ch[:, None], qj[None, :]], 0.0)
    expand = (grp[:, None] == jnp.arange(g_sub)[None, :]).astype(f32)   # (base, g_sub)
    seg = expand.T                                                      # (g_sub, base)

    bt_col = params["base_temp"][ch]
    tpb1_col = params["tp_b1"][ch]
    tpb2_col = params["tp_b2"][ch]
    cab2_col = params["ca_b2"][ch]
    cab1_pad = jnp.zeros((base, 1), f32).at[:gc2].set(params["ca_b1"][qj])

    p_r = jnp.concatenate([tp1_bd, tp2_bd] + maxperms +
                          [expand, ca2_bd, bt_col, tpb1_col, tpb2_col,
                           cab2_col, cab1_pad], axis=1)
    p_g = jnp.concatenate([ca1_bd, seg], axis=0)

    kernel = functools.partial(
        _adaptive_temp_kernel, base=base, g_sub=g_sub, gc2=gc2, num_c=C, bb=bb,
        inv_log_c=(1.0 / math.log(C)) if C > 1 else 1.0, inv_hw=1.0 / HW)

    grid_spec = pltpu.PrefetchScalarGridSpec(
        num_scalar_prefetch=0,
        grid=(n_blocks,),
        in_specs=[
            pl.BlockSpec((R, L), lambda i: (i, 0)),
            pl.BlockSpec(p_r.shape, lambda i: (0, 0)),
            pl.BlockSpec(p_g.shape, lambda i: (0, 0)),
        ],
        out_specs=pl.BlockSpec((R, L), lambda i: (i, 0)),
    )

    out = pl.pallas_call(
        kernel,
        out_shape=jax.ShapeDtypeStruct((R_pad, L), f32),
        grid_spec=grid_spec,
        compiler_params=pltpu.CompilerParams(
            dimension_semantics=("parallel",),
            vmem_limit_bytes=vmem_limit,
        ),
    )(x, p_r, p_g)

    return out[:R_total, :HW].reshape(N, C, H, W)


def make_params(key, num_classes=NUM_CLASSES, initial_temp=INITIAL_TEMP):
    """Deterministic synthetic parameter initialization (PyTorch-like shapes)."""
    C = num_classes
    ks = jax.random.split(key, 8)
    f32 = jnp.float32

    base_temp = jnp.full((C, 1), initial_temp, f32)

    # channel attention: Conv2d(C, C//2, 1), Conv2d(C//2, C, 1)
    ca_w1 = 0.3 * jax.random.normal(ks[0], (C // 2, C), f32)
    ca_b1 = 0.1 * jax.random.normal(ks[1], (C // 2, 1), f32)
    ca_w2 = 0.3 * jax.random.normal(ks[2], (C, C // 2), f32)
    ca_b2 = 0.1 * jax.random.normal(ks[3], (C, 1), f32)

    # temp predictor: Conv2d(C, C, 1) + BatchNorm2d(C) (eval stats) + Conv2d(C, C, 1)
    tp_w1 = 0.3 * jax.random.normal(ks[4], (C, C), f32)
    tp_b1 = 0.1 * jax.random.normal(ks[5], (C, 1), f32)
    tp_w2 = 0.3 * jax.random.normal(ks[6], (C, C), f32)
    tp_b2 = 0.1 * jax.random.normal(ks[7], (C, 1), f32)

    # Fold eval-mode BatchNorm (gamma=1, beta=0, mean=0, var=1, eps=1e-5) into conv1.
    gamma = jnp.ones((C,), f32)
    beta = jnp.zeros((C,), f32)
    running_mean = jnp.zeros((C,), f32)
    running_var = jnp.ones((C,), f32)
    eps = 1e-5
    scale = gamma / jnp.sqrt(running_var + eps)
    shift = beta - running_mean * scale
    tp_w1_f = tp_w1 * scale[:, None]
    tp_b1_f = tp_b1 * scale[:, None] + shift[:, None]

    return {
        "base_temp": base_temp,
        "ca_w1": ca_w1, "ca_b1": ca_b1, "ca_w2": ca_w2, "ca_b2": ca_b2,
        "tp_w1": tp_w1_f, "tp_b1": tp_b1_f, "tp_w2": tp_w2, "tp_b2": tp_b2,
    }


def reference(logits, params):
    """Pure-JAX reference of the PyTorch forward (eval mode) for validation."""
    N, C, H, W = logits.shape
    x = logits.reshape(N, C, H * W).astype(jnp.float32)

    pooled = jnp.mean(x, axis=2, keepdims=True)                        # (N, C, 1)
    h = jax.nn.relu(jnp.einsum("oc,ncp->nop", params["ca_w1"], pooled)
                    + params["ca_b1"][None])
    cw = jax.nn.sigmoid(jnp.einsum("oc,ncp->nop", params["ca_w2"], h)
                        + params["ca_b2"][None])                       # (N, C, 1)

    p = jax.nn.softmax(x, axis=1)
    entropy = -jnp.sum(p * jnp.log(p + 1e-10), axis=1, keepdims=True)  # (N, 1, HW)
    conf = 1.0 - entropy / jnp.log(jnp.float32(C))

    h1 = jax.nn.relu(jnp.einsum("oc,ncp->nop", params["tp_w1"], x)
                     + params["tp_b1"][None])
    tf = 0.5 + jax.nn.sigmoid(jnp.einsum("oc,ncp->nop", params["tp_w2"], h1)
                              + params["tp_b2"][None])

    eff = params["base_temp"][None] * tf * cw * conf
    eff = jnp.clip(eff, MIN_TEMP, MAX_TEMP)
    return (x / eff).reshape(N, C, H, W)


if __name__ == "__main__":
    key = jax.random.PRNGKey(0)
    k_params, k_x = jax.random.split(key)

    params = make_params(k_params)
    logits = jax.random.normal(k_x, (2, NUM_CLASSES, 16, 16), jnp.float32)

    out = adaptive_temperature_scaling(logits, params)
    out = jax.block_until_ready(out)

    ref = jax.block_until_ready(reference(logits, params))
    assert out.shape == logits.shape and out.dtype == jnp.float32
    assert jnp.allclose(out, ref, atol=1e-3, rtol=1e-3), "mismatch vs reference"

    print("KERNEL_OK")
</pallas_src>

<mosaic_0001>
module attributes {stable_mosaic.version = 11 : i64} {
  func.func @_adaptive_temp_kernel(%arg0: i32, %arg1: memref<8x256xf32, #tpu.memory_space<vmem>>, %arg2: memref<8x51xf32, #tpu.memory_space<vmem>>, %arg3: memref<6x8xf32, #tpu.memory_space<vmem>>, %arg4: memref<8x256xf32, #tpu.memory_space<vmem>>) attributes {dimension_semantics = [#tpu.dimension_semantics<parallel>], iteration_bounds = array<i64: 1>, scalar_prefetch = 0 : i64, scratch_operands = 0 : i64, tpu.core_type = #tpu.core_type<tc>, window_params = [{transform_indices = @transform_0, window_bounds = array<i64: 8, 256>}, {pipeline_mode = #tpu.pipeline_mode<synchronous>, transform_indices = @transform_1, window_bounds = array<i64: 8, 51>}, {pipeline_mode = #tpu.pipeline_mode<synchronous>, transform_indices = @transform_2, window_bounds = array<i64: 6, 8>}, {transform_indices = @transform_3, window_bounds = array<i64: 8, 256>}]} {
    %c0 = arith.constant 0 : index
    %c0_0 = arith.constant 0 : index
    %0 = vector.load %arg2[%c0, %c0_0] : memref<8x51xf32, #tpu.memory_space<vmem>>, vector<8x51xf32>
    %c0_1 = arith.constant 0 : index
    %c0_2 = arith.constant 0 : index
    %1 = vector.load %arg3[%c0_1, %c0_2] : memref<6x8xf32, #tpu.memory_space<vmem>>, vector<6x8xf32>
    %2 = vector.extract_strided_slice %0 {offsets = [0, 0], sizes = [8, 8], strides = [1, 1]} : vector<8x51xf32> to vector<8x8xf32>
    %3 = vector.extract_strided_slice %0 {offsets = [0, 8], sizes = [8, 8], strides = [1, 1]} : vector<8x51xf32> to vector<8x8xf32>
    %4 = vector.extract_strided_slice %0 {offsets = [0, 16], sizes = [8, 8], strides = [1, 1]} : vector<8x51xf32> to vector<8x8xf32>
    %5 = vector.extract_strided_slice %0 {offsets = [0, 24], sizes = [8, 8], strides = [1, 1]} : vector<8x51xf32> to vector<8x8xf32>
    %6 = vector.extract_strided_slice %0 {offsets = [0, 32], sizes = [8, 8], strides = [1, 1]} : vector<8x51xf32> to vector<8x8xf32>
    %7 = vector.extract_strided_slice %0 {offsets = [0, 40], sizes = [8, 2], strides = [1, 1]} : vector<8x51xf32> to vector<8x2xf32>
    %8 = vector.extract_strided_slice %0 {offsets = [0, 42], sizes = [8, 4], strides = [1, 1]} : vector<8x51xf32> to vector<8x4xf32>
    %9 = vector.extract_strided_slice %0 {offsets = [0, 46], sizes = [8, 1], strides = [1, 1]} : vector<8x51xf32> to vector<8x1xf32>
    %10 = vector.extract_strided_slice %0 {offsets = [0, 47], sizes = [8, 1], strides = [1, 1]} : vector<8x51xf32> to vector<8x1xf32>
    %11 = vector.extract_strided_slice %0 {offsets = [0, 48], sizes = [8, 1], strides = [1, 1]} : vector<8x51xf32> to vector<8x1xf32>
    %12 = vector.extract_strided_slice %0 {offsets = [0, 49], sizes = [8, 1], strides = [1, 1]} : vector<8x51xf32> to vector<8x1xf32>
    %13 = vector.extract_strided_slice %0 {offsets = [0, 50], sizes = [4, 1], strides = [1, 1]} : vector<8x51xf32> to vector<4x1xf32>
    %14 = vector.extract_strided_slice %1 {offsets = [0, 0], sizes = [4, 8], strides = [1, 1]} : vector<6x8xf32> to vector<4x8xf32>
    %15 = vector.extract_strided_slice %1 {offsets = [4, 0], sizes = [2, 8], strides = [1, 1]} : vector<6x8xf32> to vector<2x8xf32>
    %c0_3 = arith.constant 0 : index
    %c0_4 = arith.constant 0 : index
    %16 = vector.load %arg1[%c0_3, %c0_4] : memref<8x256xf32, #tpu.memory_space<vmem>>, vector<8x256xf32>
    %cst = arith.constant dense<0.000000e+00> : vector<8x256xf32>
    %17 = tpu.matmul %4, %16, %cst {dimension_numbers = #tpu.dot_dimension_numbers<[1], [0], [0], [1], [0, 0, 1, 1], [], []>} : vector<8x8xf32>, vector<8x256xf32>, vector<8x256xf32> -> vector<8x256xf32>
    %18 = arith.maximumf %16, %17 : vector<8x256xf32>
    %cst_5 = arith.constant dense<0.000000e+00> : vector<8x256xf32>
    %19 = tpu.matmul %5, %16, %cst_5 {dimension_numbers = #tpu.dot_dimension_numbers<[1], [0], [0], [1], [0, 0, 1, 1], [], []>} : vector<8x8xf32>, vector<8x256xf32>, vector<8x256xf32> -> vector<8x256xf32>
    %20 = arith.maximumf %18, %19 : vector<8x256xf32>
    %cst_6 = arith.constant dense<0.000000e+00> : vector<8x256xf32>
    %21 = tpu.matmul %6, %16, %cst_6 {dimension_numbers = #tpu.dot_dimension_numbers<[1], [0], [0], [1], [0, 0, 1, 1], [], []>} : vector<8x8xf32>, vector<8x256xf32>, vector<8x256xf32> -> vector<8x256xf32>
    %22 = arith.maximumf %20, %21 : vector<8x256xf32>
    %23 = arith.subf %16, %22 : vector<8x256xf32>
    %24 = math.exp %23 : vector<8x256xf32>
    %cst_7 = arith.constant dense<0.000000e+00> : vector<2x256xf32>
    %25 = tpu.matmul %15, %24, %cst_7 {dimension_numbers = #tpu.dot_dimension_numbers<[1], [0], [0], [1], [0, 0, 1, 1], [], []>} : vector<2x8xf32>, vector<8x256xf32>, vector<2x256xf32> -> vector<2x256xf32>
    %26 = arith.mulf %24, %23 : vector<8x256xf32>
    %cst_8 = arith.constant dense<0.000000e+00> : vector<2x256xf32>
    %27 = tpu.matmul %15, %26, %cst_8 {dimension_numbers = #tpu.dot_dimension_numbers<[1], [0], [0], [1], [0, 0, 1, 1], [], []>} : vector<2x8xf32>, vector<8x256xf32>, vector<2x256xf32> -> vector<2x256xf32>
    %cst_9 = arith.constant 1.000000e-30 : f32
    %28 = vector.broadcast %cst_9 : f32 to vector<2x256xf32>
    %29 = arith.maximumf %25, %28 : vector<2x256xf32>
    %30 = tpu.reciprocal %29 {approx = true} : vector<2x256xf32> -> vector<2x256xf32>
    %31 = arith.mulf %29, %30 : vector<2x256xf32>
    %cst_10 = arith.constant 2.000000e+00 : f32
    %32 = vector.broadcast %cst_10 : f32 to vector<2x256xf32>
    %33 = arith.subf %32, %31 : vector<2x256xf32>
    %34 = arith.mulf %30, %33 : vector<2x256xf32>
    %35 = math.log %29 : vector<2x256xf32>
    %36 = arith.mulf %27, %34 : vector<2x256xf32>
    %37 = arith.subf %35, %36 : vector<2x256xf32>
    %cst_11 = arith.constant 0.72134751 : f32
    %38 = vector.broadcast %cst_11 : f32 to vector<2x256xf32>
    %39 = arith.mulf %37, %38 : vector<2x256xf32>
    %cst_12 = arith.constant 1.000000e+00 : f32
    %40 = vector.broadcast %cst_12 : f32 to vector<2x256xf32>
    %41 = arith.subf %40, %39 : vector<2x256xf32>
    %cst_13 = arith.constant dense<0.000000e+00> : vector<8x256xf32>
    %42 = tpu.matmul %7, %41, %cst_13 {dimension_numbers = #tpu.dot_dimension_numbers<[1], [0], [0], [1], [0, 0, 1, 1], [], []>} : vector<8x2xf32>, vector<2x256xf32>, vector<8x256xf32> -> vector<8x256xf32>
    %cst_14 = arith.constant dense<0.000000e+00> : vector<8xf32>
    %43 = vector.multi_reduction <add>, %16, %cst_14 [1] : vector<8x256xf32> to vector<8xf32>
    %44 = vector.shape_cast %43 : vector<8xf32> to vector<8x1xf32>
    %cst_15 = arith.constant 3.906250e-03 : f32
    %45 = vector.broadcast %cst_15 : f32 to vector<8x1xf32>
    %46 = arith.mulf %44, %45 : vector<8x1xf32>
    %cst_16 = arith.constant dense<0.000000e+00> : vector<4x1xf32>
    %47 = tpu.matmul %14, %46, %cst_16 {dimension_numbers = #tpu.dot_dimension_numbers<[1], [0], [0], [1], [0, 0, 1, 1], [], []>} : vector<4x8xf32>, vector<8x1xf32>, vector<4x1xf32> -> vector<4x1xf32>
    %48 = arith.addf %47, %13 : vector<4x1xf32>
    %cst_17 = arith.constant 0.000000e+00 : f32
    %49 = vector.broadcast %cst_17 : f32 to vector<4x1xf32>
    %50 = arith.maximumf %48, %49 : vector<4x1xf32>
    %cst_18 = arith.constant dense<0.000000e+00> : vector<8x1xf32>
    %51 = tpu.matmul %8, %50, %cst_18 {dimension_numbers = #tpu.dot_dimension_numbers<[1], [0], [0], [1], [0, 0, 1, 1], [], []>} : vector<8x4xf32>, vector<4x1xf32>, vector<8x1xf32> -> vector<8x1xf32>
    %52 = arith.addf %51, %12 : vector<8x1xf32>
    %53 = arith.negf %52 : vector<8x1xf32>
    %54 = math.exp %53 : vector<8x1xf32>
    %cst_19 = arith.constant 1.000000e+00 : f32
    %55 = vector.broadcast %cst_19 : f32 to vector<8x1xf32>
    %56 = arith.addf %55, %54 : vector<8x1xf32>
    %57 = arith.divf %55, %56 : vector<8x1xf32>
    %58 = arith.mulf %9, %57 : vector<8x1xf32>
    %cst_20 = arith.constant dense<0.000000e+00> : vector<8x256xf32>
    %59 = tpu.matmul %2, %16, %cst_20 {dimension_numbers = #tpu.dot_dimension_numbers<[1], [0], [0], [1], [0, 0, 1, 1], [], []>} : vector<8x8xf32>, vector<8x256xf32>, vector<8x256xf32> -> vector<8x256xf32>
    %60 = vector.broadcast %10 : vector<8x1xf32> to vector<8x256xf32>
    %61 = arith.addf %59, %60 : vector<8x256xf32>
    %cst_21 = arith.constant 0.000000e+00 : f32
    %62 = vector.broadcast %cst_21 : f32 to vector<8x256xf32>
    %63 = arith.maximumf %61, %62 : vector<8x256xf32>
    %cst_22 = arith.constant dense<0.000000e+00> : vector<8x256xf32>
    %64 = tpu.matmul %3, %63, %cst_22 {dimension_numbers = #tpu.dot_dimension_numbers<[1], [0], [0], [1], [0, 0, 1, 1], [], []>} : vector<8x8xf32>, vector<8x256xf32>, vector<8x256xf32> -> vector<8x256xf32>
    %65 = vector.broadcast %11 : vector<8x1xf32> to vector<8x256xf32>
    %66 = arith.addf %64, %65 : vector<8x256xf32>
    %cst_23 = arith.constant 5.000000e-01 : f32
    %67 = vector.broadcast %cst_23 : f32 to vector<8x256xf32>
    %68 = arith.mulf %67, %66 : vector<8x256xf32>
    %69 = math.tanh %68 : vector<8x256xf32>
    %cst_24 = arith.constant 5.000000e-01 : f32
    %70 = vector.broadcast %cst_24 : f32 to vector<8x256xf32>
    %71 = arith.mulf %70, %69 : vector<8x256xf32>
    %cst_25 = arith.constant 1.000000e+00 : f32
    %72 = vector.broadcast %cst_25 : f32 to vector<8x256xf32>
    %73 = arith.addf %72, %71 : vector<8x256xf32>
    %74 = vector.broadcast %58 : vector<8x1xf32> to vector<8x256xf32>
    %75 = arith.mulf %74, %73 : vector<8x256xf32>
    %76 = arith.mulf %75, %42 : vector<8x256xf32>
    %cst_26 = arith.constant 1.000000e-01 : f32
    %cst_27 = arith.constant 5.000000e+00 : f32
    %77 = vector.broadcast %cst_26 : f32 to vector<8x256xf32>
    %78 = arith.maximumf %77, %76 : vector<8x256xf32>
    %79 = vector.broadcast %cst_27 : f32 to vector<8x256xf32>
    %80 = arith.minimumf %79, %78 : vector<8x256xf32>
    %81 = tpu.reciprocal %80 {approx = true} : vector<8x256xf32> -> vector<8x256xf32>
    %82 = arith.mulf %80, %81 : vector<8x256xf32>
    %cst_28 = arith.constant 2.000000e+00 : f32
    %83 = vector.broadcast %cst_28 : f32 to vector<8x256xf32>
    %84 = arith.subf %83, %82 : vector<8x256xf32>
    %85 = arith.mulf %81, %84 : vector<8x256xf32>
    %86 = arith.mulf %16, %85 : vector<8x256xf32>
    %c0_29 = arith.constant 0 : index
    %c0_30 = arith.constant 0 : index
    %87 = vector.load %arg4[%c0_29, %c0_30] : memref<8x256xf32, #tpu.memory_space<vmem>>, vector<8x256xf32>
    tpu.vector_store %arg4[%c0_29, %c0_30], %86 {strides = array<i32>} : memref<8x256xf32, #tpu.memory_space<vmem>>, vector<8x256xf32>,
    return
  }
  func.func @transform_0(%arg0: i32) -> (i32, i32) {
    %c0_i32 = arith.constant 0 : i32
    %c0_i32_0 = arith.constant 0 : i32
    return %arg0, %c0_i32 : i32, i32
  }
  func.func @transform_1(%arg0: i32) -> (i32, i32) {
    %c0_i32 = arith.constant 0 : i32
    %c0_i32_0 = arith.constant 0 : i32
    %c0_i32_1 = arith.constant 0 : i32
    return %c0_i32, %c0_i32_0 : i32, i32
  }
  func.func @transform_2(%arg0: i32) -> (i32, i32) {
    %c0_i32 = arith.constant 0 : i32
    %c0_i32_0 = arith.constant 0 : i32
    %c0_i32_1 = arith.constant 0 : i32
    return %c0_i32, %c0_i32_0 : i32, i32
  }
  func.func @transform_3(%arg0: i32) -> (i32, i32) {
    %c0_i32 = arith.constant 0 : i32
    %c0_i32_0 = arith.constant 0 : i32
    return %arg0, %c0_i32 : i32, i32
  }
}

</mosaic_0001>

<bundles_post_ra>
// kernel: tpu_custom_call.1
= control target key start
LH: loop header
LB: loop body
LE: loop exit
PB: predicated region body
PF: predicated region fallthrough
CT: control target
= control target key end

     0   :  { %8 = vsyncpa [#allocation3], 0  ;;  %s1192_s0 = inlined_call_operand.hbm [shape: f32[8,256], index: 0, kind: input, shape index: {}]   ;;  %s1193_s1 = inlined_call_operand.hbm [shape: f32[8,51], index: 1, kind: input, shape index: {}]   ;;  %s1194_s2 = inlined_call_operand.hbm [shape: f32[6,8], index: 2, kind: input, shape index: {}]   ;;  %s1195_s3 = inlined_call_operand.hbm [shape: f32[8,256], index: 3, kind: output, shape index: {}]  }
   0x1   :  { %9 = vsyncpa [#allocation6], 0 }
   0x2   :  { %10 = vsyncpa [#allocation4], 0  ;;  %s1086_s12 = smov [#allocation5]   ;;  %s1087_s14 = smov [#allocation2]  }
   0x3   :  { %s27_s13 = sshll.u32 %s1086_s12, 4  ;;  %s17_s15 = sshll.u32 %s1087_s14, 4  ;;  %s28_s13 = int_to_ptr.vmem [resolvable:$true] %s27_s13  ;;  %s18_s15 = int_to_ptr.vmem [resolvable:$true] %s17_s15 }
   0x4   :  { %s1008_s16 = scalar_lea.vmem %s28_s13, 128  ;;  %p1013_p1 = scmp.lt.s32.totalorder %s28_s13, %s28_s13 }
   0x5   :  { %p1009_p0 = scmp.ne.s32.totalorder %s28_s13, %s1008_s16  ;;  %p1014_p2 = scmp.lt.s32.totalorder %s1008_s16, %s1008_s16 }
   0x7   :  { %p1015_p3 = por %p1014_p2, %p1013_p1 }
   0x9   :  { %p1016_p4 = pnand %p1015_p3, %p1009_p0 }
   0xb   :  { %1019 = shalt.err (!%p1016_p4)
}
   0xc   :  { %30 = dma.hbm_to_vmem [thread:$0]  %s1193_s1, 128, %s28_s13, [#allocation6]  }
   0xd   :  { %s1028_s19 = scalar_lea.vmem %s18_s15, 256  ;;  %p1033_p6 = scmp.lt.s32.totalorder %s18_s15, %s18_s15 }
   0xe   :  { %p1029_p5 = scmp.ne.s32.totalorder %s18_s15, %s1028_s19  ;;  %p1034_p7 = scmp.lt.s32.totalorder %s1028_s19, %s1028_s19 }
  0x10   :  { %p1035_p8 = por %p1034_p7, %p1033_p6 }
  0x12   :  { %p1036_p9 = pnand %p1035_p8, %p1029_p5 }
  0x14   :  { %1039 = shalt.err (!%p1036_p9)
}
  0x15   :  { %20 = dma.hbm_to_vmem [thread:$0]  %s1192_s0, 256, %s18_s15, [#allocation3]  }
  0x16   :  { %s1088_s22 = smov [#allocation7]  }
  0x17   :  { %s37_s23 = sshll.u32 %s1088_s22, 4  ;;  %s38_s23 = int_to_ptr.vmem [resolvable:$true] %s37_s23 }
  0x18   :  { %s1048_s24 = scalar_lea.vmem %s38_s23, 128  ;;  %p1053_p11 = scmp.lt.s32.totalorder %s38_s23, %s38_s23 }
  0x19   :  { %p1049_p10 = scmp.ne.s32.totalorder %s38_s23, %s1048_s24  ;;  %p1054_p12 = scmp.lt.s32.totalorder %s1048_s24, %s1048_s24 }
  0x1b   :  { %p1055_p13 = por %p1054_p12, %p1053_p11 }
  0x1d   :  { %p1056_p0 = pnand %p1055_p13, %p1049_p10 }
  0x1f   :  { %1059 = shalt.err (!%p1056_p0)
}
  0x20   :  { %40 = dma.hbm_to_vmem [thread:$0]  %s1194_s2, 128, %s38_s23, [#allocation6]  }
  0x21   :  { %1080 = dma.done.wait [#allocation3], 256  }
  0x22   :  { %1081 = vsyncadd [#allocation3], 4294967040 }
  0x23   :  { %1082 = dma.done.wait [#allocation6], 256  }
  0x24   :  { %1083 = vsyncadd [#allocation6], 4294967040  ;;  %v1089_v0 = vmov 0.0   ;;  %v1135_v1 = vld [vmem:[#allocation5] sm:$0xff]  ;;  %v1137_v2 = vld [vmem:[#allocation2 + $0x8] sm:$0xff]  ;;  %s1090_s0 = smov 112  }
  0x25   :  { %124 = vmatprep.mubr.f32.mxu0 %v1089_v0  ;;  %201 = vmatprep.mubr.f32.mxu1 %v1089_v0  ;;  %v1139_v3 = vld [vmem:[#allocation2] sm:$0xff]  ;;  %s1091_s26 = smov 96   ;;  %s1092_s2 = smov 104   ;;  %vm57_vm0 = vcmask 64512   ;;  %v51_v24 = vld [vmem:[#allocation7] sm:$0x3f] }
  0x26   :  { %55 = vrot.lane.b32.xlu0 %v1135_v1, %s1090_s0  ;;  %210 = vrot.lane.b32.xlu1 %v1135_v1, %s1091_s26  ;;  %v546_v4 = vadd.f32 %v1137_v2, %v1139_v3  ;;  %s1093_s27 = smov 78   ;;  %s1094_s28 = smov 88   ;;  %v294_v26 = vrot.slane %v51_v24, 4  ;;  %vm1096_vm1 = vmmov 0   ;;  %v1097_v32 = vmov 47  }
  0x27   :  { %90 = vmatprep.subr.mxu0 %v1137_v2  ;;  %167 = vmatprep.subr.mxu1 %v1137_v2  ;;  %s1095_s29 = smov 86   ;;  %s1098_s30 = smov 120   ;;  %vm468_vm2 = vcmask 1041408   ;;  %vm465_vm3 = vcmask 15360   ;;  %vm634_vm4 = vcmask 1043456   ;;  %vm631_vm5 = vcmask 31744  }
  0x28   :  { %91 = vmatpush1.msra.mxu0 %v1139_v3  ;;  %168 = vmatpush1.msra.mxu1 %v1139_v3  ;;  %s1099_s4 = smov 79   ;;  %s1102_s5 = smov 46  }
  0x29   :  { %244 = vmatprep.subr.mxu0 %v1137_v2  ;;  %972 = vset.pattern.permute.xlu0 %v1097_v32  ;;  %s1103_s6 = smov [#allocation8]  }
  0x2a   :  { %133 = vrot.lane.b32.xlu0 %v1135_v1, %s1092_s2  ;;  %s916_s7 = sshll.u32 %s1103_s6, 4  ;;  %s917_s7 = int_to_ptr.vmem [resolvable:$true] %s916_s7 }
  0x2b   :  { %s1060_s8 = scalar_lea.vmem %s917_s7, 256  ;;  %p1065_p2 = scmp.lt.s32.totalorder %s917_s7, %s917_s7 }
  0x2c   :  { %p1061_p1 = scmp.ne.s32.totalorder %s917_s7, %s1060_s8  ;;  %p1066_p3 = scmp.lt.s32.totalorder %s1060_s8, %s1060_s8 }
  0x2e   :  { %550 = vrot.lane.b32.xlu0 %v1135_v1, %s1093_s27  ;;  %p1067_p4 = por %p1066_p3, %p1065_p2 }
  0x30   :  { %p1068_p5 = pnand %p1067_p4, %p1061_p1 }
  0x32   :  { %463 = vrot.lane.b32.xlu0 %v1135_v1, %s1094_s28 }
  0x36   :  { %626 = vrot.lane.b32.xlu0 %v1135_v1, %s1095_s29 }
  0x3a   :  { %720 = vperm.xlu0 %972, %v1135_v1  }
  0x3e   :  { %802 = vrot.lane.b32.xlu0 %v1135_v1, %s1098_s30 }
  0x42   :  { %628 = vrot.lane.b32.xlu0 %v1135_v1, %s1099_s4 }
  0x4a   :  { %547 = vadd.xlane.f32.xlu1 %v546_v4 }
  0x98   :  { %v56_v5 = vpop.permute.xlu0 %55  ;;  %v211_v6 = vpop.permute.xlu1 %210 }
  0x99   :  { %926 = vmatmul.mubr.msk.f32.vlgmr.msra.gmra.mxu0 %vm57_vm0, %v56_v5 }
  0x9a   :  { %245 = vmatpush1.msra.mxu0 %v1139_v3  ;;  %278 = vmatprep.mubr.f32.mxu0 %v1089_v0 }
  0x9c   :  { %v134_v7 = vpop.permute.xlu0 %133 }
  0x9d   :  { %927 = vmatmul.mubr.msk.f32.vlgmr.msra.gmra.mxu1 %vm57_vm0, %v134_v7  ;;  %928 = vmatmul.mubr.msk.f32.vlgmr.msra.gmra.mxu0 %vm57_vm0, %v211_v6 }
  0x9e   :  { %361 = vmatprep.mubr.f32.mxu1 %v1089_v0  ;;  %434 = vmatprep.mubr.f32.mxu0 %v1089_v0 }
  0xa0   :  { %v551_v47 = vpop.permute.xlu0 %550 }
  0xa4   :  { %v464_v57 = vpop.permute.xlu0 %463 }
  0xa8   :  { %v627_v6 = vpop.permute.xlu0 %626 }
  0xd3   :  { %v548_v27 = vpop.xlane.xlu1 %547 }
  0xd4   :  { %v549_v31 = vmul.f32 0.00390625, %v548_v27 }
 0x159   :  { %v126_v8 = vpop.f32.mrf.mxu0 }
 0x15a   :  { %v131_v10 = vmax.f32 %v1139_v3, %v126_v8  ;;  %v721_v8 = vpop.permute.xlu0 %720 }
 0x15b   :  { %v128_v9 = vpop.f32.mrf.mxu0 }
 0x15c   :  { %v132_v13 = vmax.f32 %v1137_v2, %v128_v9 }
 0x15d   :  { %v203_v11 = vpop.f32.mrf.mxu1  ;;  %v280_v12 = vpop.f32.mrf.mxu0 }
 0x15e   :  { %v208_v14 = vmax.f32 %v131_v10, %v203_v11 }
 0x15f   :  { %v205_v15 = vpop.f32.mrf.mxu1  ;;  %v282_v18 = vpop.f32.mrf.mxu0 }
 0x160   :  { %v285_v16 = vmax.f32 %v208_v14, %v280_v12  ;;  %v209_v17 = vmax.f32 %v132_v13, %v205_v15  ;;  %v803_v13 = vpop.permute.xlu0 %802  ;;  %v1100_v14 = vmov 48  }
 0x161   :  { %973 = vset.pattern.permute.xlu0 %v1100_v14 }
 0x162   :  { %v287_v19 = vsub.f32 %v1139_v3, %v285_v16  ;;  %v286_v20 = vmax.f32 %v209_v17, %v282_v18 }
 0x164   :  { %v289_v21 = vmul.f32 1.442695, %v287_v19  ;;  %v288_v22 = vsub.f32 %v1137_v2, %v286_v20  ;;  %v629_v17 = vpop.permute.xlu0 %628 }
 0x166   :  { %v291_v23 = vmul.f32 1.442695, %v288_v22  ;;  %976 = vpow2.f32 %v289_v21 }
 0x168   :  { %978 = vpow2.f32 %v291_v23 }
 0x173   :  { %v977_v25 = vpop.eup %976 }
 0x174   :  { %v368_v30 = vmul.f32 %v977_v25, %v287_v19 }
 0x175   :  { %v979_v28 = vpop.eup %978 }
 0x176   :  { %327 = vmatprep.subr.mxu1 %v979_v28  ;;  %v369_v29 = vmul.f32 %v979_v28, %v288_v22 }
 0x177   :  { %328 = vmatpush1.msra.mxu1 %v977_v25 }
 0x178   :  { %929 = vmatmul.mubr.msk.f32.vlgmr.msra.gmra.mxu1 %vm57_vm0, %v294_v26  ;;  %400 = vmatprep.subr.mxu0 %v369_v29 }
 0x179   :  { %401 = vmatpush1.msra.mxu0 %v368_v30  ;;  %539 = vmatprep.mubr.f32.mxu1 %v1089_v0 }
 0x17a   :  { %930 = vmatmul.mubr.msk.f32.vlgmr.msra.gmra.mxu0 %vm57_vm0, %v294_v26  ;;  %944 = vmatprep.subr.mxu0 %v1089_v0 }
 0x17b   :  { %945 = vmatpush3.msra.mxu0 %v549_v31  ;;  %946 = vmatprep.mubr.msk.f32.mxu0 %vm1096_vm1, %v1089_v0 }
 0x17c   :  { %755 = vmatprep.subr.mxu0 %v1137_v2 }
 0x17e   :  { %947 = vmatmul.mubr.msk.f32.vlgmr.msra.gmra.mxu0 %vm57_vm0, %v51_v24  ;;  %v1101_v24 = vmov 46  }
 0x17f   :  { %756 = vmatpush1.msra.mxu0 %v1139_v3  ;;  %789 = vmatprep.mubr.f32.mxu0 %v1089_v0 }
 0x180   :  { %974 = vset.pattern.permute.xlu1 %v1101_v24 }
 0x182   :  { %938 = vmatmul.mubr.msk.f32.vlgmr.msra.gmra.mxu0 %vm57_vm0, %v1135_v1 }
 0x238   :  { %v363_v33 = vpop.f32.mrf.mxu1 }
 0x239   :  { %v441_v34 = vmax.f32 %v363_v33, 1e-30 }
 0x23a   :  { %v365_v35 = vpop.f32.mrf.mxu1  ;;  %v436_v36 = vpop.f32.mrf.mxu0 }
 0x23b   :  { %980 = vrcp.f32 %v441_v34  ;;  %v442_v37 = vmax.f32 %v365_v35, 1e-30 }
 0x23c   :  { %v438_v38 = vpop.f32.mrf.mxu0 }
 0x23d   :  { %982 = vrcp.f32 %v442_v37 }
 0x23e   :  { %v621_v39 = vpop.f32.mrf.mxu0  ;;  %984 = vlog2.f32 %v441_v34 }
 0x23f   :  { %986 = vlog2.f32 %v442_v37  ;;  %v622_v60 = vadd.f32 %v621_v39, %v551_v47 }
 0x240   :  { %v948_v40 = vpop.f32.mrf.mxu0 }
 0x241   :  { %v625_v5 = vmax.f32 %v622_v60, 0.0 }
 0x242   :  { %v791_v62 = vpop.f32.mrf.mxu0 }
 0x243   :  { %v792_v9 = vadd.f32 %v791_v62, %v721_v8 }
 0x244   :  { %v793_v7 = vpop.f32.mrf.mxu0 }
 0x245   :  { %v794_v10 = vadd.f32 %v793_v7, %v721_v8  ;;  %v796_v11 = vmax.f32 %v792_v9, 0.0 }
 0x247   :  { %v797_v12 = vmax.f32 %v794_v10, 0.0 }
 0x248   :  { %v981_v41 = vpop.eup %980 }
 0x249   :  { %v445_v42 = vmul.f32 %v981_v41, %v441_v34 }
 0x24a   :  { %v983_v43 = vpop.eup %982 }
 0x24b   :  { %v447_v44 = vsub.f32 2.0, %v445_v42  ;;  %v446_v45 = vmul.f32 %v983_v43, %v442_v37  ;;  %v985_v46 = vpop.eup %984 }
 0x24c   :  { %v987_v50 = vpop.eup %986  ;;  %v452_v51 = vmul.f32 0.6931472, %v985_v46 }
 0x24d   :  { %v449_v48 = vmul.f32 %v981_v41, %v447_v44  ;;  %v448_v49 = vsub.f32 2.0, %v446_v45  ;;  %v454_v55 = vmul.f32 0.6931472, %v987_v50 }
 0x24f   :  { %v455_v52 = vmul.f32 %v449_v48, %v436_v36  ;;  %v450_v53 = vmul.f32 %v983_v43, %v448_v49 }
 0x251   :  { %v457_v54 = vsub.f32 %v452_v51, %v455_v52  ;;  %v456_v56 = vmul.f32 %v450_v53, %v438_v38 }
 0x253   :  { %v458_v58 = vsub.f32 %v454_v55, %v456_v56  ;;  %v459_v59 = vmul.f32 0.7213475, %v457_v54 }
 0x255   :  { %v460_v61 = vmul.f32 0.7213475, %v458_v58  ;;  %v461_v4 = vsub.f32 1.0, %v459_v59 }
 0x257   :  { %v462_v63 = vsub.f32 1.0, %v460_v61 }
 0x259   :  { %931 = vmatprep.subr.msk.mxu1 %vm468_vm2, %v462_v63 }
 0x25a   :  { %932 = vmatpush1.msk.msra.mxu1 %vm468_vm2, %v461_v4 }
 0x25b   :  { %933 = vmatmul.mubr.msk.f32.vlgmr.msra.gmra.mxu1 %vm465_vm3, %v464_v57  ;;  %949 = vmatprep.subr.mxu1 %v1089_v0 }
 0x25c   :  { %950 = vmatpush3.msk.msra.mxu1 %vm634_vm4, %v625_v5  ;;  %951 = vmatprep.mubr.msk.f32.mxu1 %vm1096_vm1, %v1089_v0 }
 0x25d   :  { %836 = vmatprep.subr.mxu1 %v797_v12 }
 0x25f   :  { %952 = vmatmul.mubr.msk.f32.vlgmr.msra.gmra.mxu1 %vm631_vm5, %v627_v6 }
 0x260   :  { %870 = vmatprep.mubr.f32.mxu1 %v1089_v0  ;;  %837 = vmatpush1.msra.mxu1 %v796_v11 }
 0x263   :  { %939 = vmatmul.mubr.msk.f32.vlgmr.msra.gmra.mxu1 %vm57_vm0, %v803_v13 }
 0x31b   :  { %v541_v15 = vpop.f32.mrf.mxu1 }
 0x31d   :  { %v543_v16 = vpop.f32.mrf.mxu1 }
 0x31f   :  { %v704_v18 = vpop.f32.mrf.mxu1 }
 0x320   :  { %v705_v19 = vadd.f32 %v704_v18, %v629_v17 }
 0x321   :  { %v953_v20 = vpop.f32.mrf.mxu1 }
 0x322   :  { %v937_v21 = vmul.f32 -1.442695, %v705_v19 }
 0x323   :  { %v872_v27 = vpop.f32.mrf.mxu1 }
 0x324   :  { %988 = vpow2.f32 %v937_v21 }
 0x325   :  { %v874_v29 = vpop.f32.mrf.mxu1 }
 0x331   :  { %v989_v22 = vpop.eup %988 }
 0x332   :  { %v711_v23 = vadd.f32 1.0, %v989_v22 }
 0x334   :  { %990 = vrcp.f32 %v711_v23 }
 0x341   :  { %v991_v0 = vpop.eup %990 }
 0x342   :  { %715 = vrot.lane.b32.xlu0 %v991_v0, %s1102_s5 }
 0x346   :  { %799 = vperm.xlu0 %973, %v1135_v1  }
 0x34a   :  { %975 = vset.pattern.permute.xlu0 %v1101_v24 }
 0x3b4   :  { %v716_v25 = vpop.permute.xlu0 %715 }
 0x3b5   :  { %v718_v26 = vmul.f32 %v716_v25, %v1135_v1 }
 0x3b7   :  { %887 = vperm.xlu1 %974, %v718_v26  }
 0x3c1   :  { %v800_v28 = vpop.permute.xlu0 %799 }
 0x3c2   :  { %v873_v30 = vadd.f32 %v872_v27, %v800_v28  ;;  %v875_v31 = vadd.f32 %v874_v29, %v800_v28 }
 0x3c4   :  { %v877_v32 = vmul.f32 0.5, %v873_v30  ;;  %v878_v33 = vmul.f32 0.5, %v875_v31 }
 0x3c6   :  { %992 = vtanh.f32 %v877_v32 }
 0x3c7   :  { %994 = vtanh.f32 %v878_v33 }
 0x3d3   :  { %v993_v34 = vpop.eup %992 }
 0x3d4   :  { %v995_v35 = vpop.eup %994  ;;  %v881_v36 = vmul.f32 0.5, %v993_v34 }
 0x3d5   :  { %v882_v37 = vmul.f32 0.5, %v995_v35 }
 0x3d6   :  { %v883_v38 = vadd.f32 1.0, %v881_v36 }
 0x3d7   :  { %v884_v39 = vadd.f32 1.0, %v882_v37 }
 0x432   :  { %v888_v40 = vpop.permute.xlu1 %887 }
 0x433   :  { %v890_v41 = vmul.f32 %v888_v40, %v883_v38  ;;  %v891_v42 = vmul.f32 %v888_v40, %v884_v39 }
 0x435   :  { %v892_v1 = vmul.f32 %v890_v41, %v541_v15  ;;  %v893_v43 = vmul.f32 %v891_v42, %v543_v16 }
 0x437   :  { %v894_v44 = vmax.f32 %v892_v1, 0.1  ;;  %v895_v45 = vmax.f32 %v893_v43, 0.1 }
 0x439   :  { %v896_v46 = vmin.f32 %v894_v44, 5.0  ;;  %v897_v47 = vmin.f32 %v895_v45, 5.0 }
 0x43b   :  { %996 = vrcp.f32 %v896_v46 }
 0x43c   :  { %998 = vrcp.f32 %v897_v47 }
 0x448   :  { %v997_v48 = vpop.eup %996 }
 0x449   :  { %v999_v49 = vpop.eup %998  ;;  %v900_v50 = vmul.f32 %v997_v48, %v896_v46 }
 0x44a   :  { %v901_v51 = vmul.f32 %v999_v49, %v897_v47 }
 0x44b   :  { %v902_v52 = vsub.f32 2.0, %v900_v50 }
 0x44c   :  { %v903_v53 = vsub.f32 2.0, %v901_v51 }
 0x44d   :  { %v904_v54 = vmul.f32 %v997_v48, %v902_v52 }
 0x44e   :  { %v905_v55 = vmul.f32 %v999_v49, %v903_v53 }
 0x44f   :  { %v906_v56 = vmul.f32 %v904_v54, %v1139_v3 }
 0x450   :  { %v907_v57 = vmul.f32 %v905_v55, %v1137_v2 }
 0x451   :  { %908 = vst [vmem:[#allocation8] sm:$0xff] %v906_v56 }
 0x452   :  { %909 = vst [vmem:[#allocation8 + $0x8] sm:$0xff] %v907_v57 }
 0x453   :  { %1071 = shalt.err (!%p1068_p5)
}
 0x454   :  { %919 = dma.vmem_to_hbm [thread:$0]  %s917_s7, 256, %s1195_s3, [#allocation4]  }
 0x455   :  { %1084 = dma.done.wait [#allocation4], 256  }
 0x456   :  { %1085 = vsyncadd [#allocation4], 4294967040 }
 0x457   :  { %923 = vsyncpa [#allocation3], 1 }
 0x458   :  { %924 = vsyncpa [#allocation6], 1 }
 0x459   :  { %925 = vsyncpa [#allocation4], 1 }

</bundles_post_ra>
